<compile_context>
chip_gen: v7x
topology: tpu7x:2x2x1
jax: 0.10.0
libtpu: 0.0.40
codegen_flags: <defaults>
</compile_context>

<pallas_src>
import functools

import jax
import jax.numpy as jnp
from jax.experimental import pallas as pl
from jax.experimental.pallas import tpu as pltpu


def _pick_blocks(n, d, h, max_rows):
    """Choose (Bn, Bd) with Bn | n and Bd | d.

    Maximize rows = Bn*Bd*h (fewer grid steps, larger MXU M / larger
    elementwise tiles) subject to rows <= max_rows and at least 2 grid steps
    (so the "parallel" grid can shard across both v7x TensorCores).
    """
    cap = max(max_rows, h)           # always allow Bn = Bd = 1
    best_key, best = None, (1, 1)
    for bn in range(1, n + 1):
        if n % bn:
            continue
        for bd in range(1, d + 1):
            if d % bd:
                continue
            rows = bn * bd * h
            steps = (n // bn) * (d // bd)
            if rows > cap:
                continue
            if n * d >= 2 and steps < 2:
                continue
            key = (rows, -steps)
            if best_key is None or key > best_key:
                best_key, best = key, (bn, bd)
    return best


def _build_banded_weights(w_hwio, W):
    """Expand (KH, KW, Cin, Cout) weights into KH banded matrices.

    Channel-major lane ordering, "same" padding folded in:
      band[dy][ci*W + wq, co*W + w] = w_hwio[dy, dx, ci, co]
        with wq = w + dx - KW//2, entries only when 0 <= wq < W,
    so (M, W*Cin) @ band[dy] computes every in-range KW tap of row offset dy
    in one lane-dense MXU matmul, with no lane-shifted / padded lhs.
    """
    KH, KW, Cin, Cout = w_hwio.shape
    pad = KW // 2
    bands = []
    for dy in range(KH):
        m = jnp.zeros((Cin * W, Cout * W), w_hwio.dtype)
        for dx in range(KW):
            # shift[wq, w] = 1  iff  wq = w + dx - pad  (out-of-range = padding)
            shift = jnp.eye(W, W, k=pad - dx, dtype=w_hwio.dtype)
            m = m + jnp.kron(w_hwio[dy, dx], shift)
        bands.append(m)
    return jnp.stack(bands, axis=0)  # (KH, Cin*W, Cout*W)


# ----------------------------------------------------------------------------
# Kernel 1: conv(1,k,k) on an NCDHW block + fused BN partial statistics.
# ----------------------------------------------------------------------------
def _conv_stats_kernel(x_ref, wb_ref, y_ref, stats_ref, xp_ref):
    # x_ref:     (Bn, Cin, Bd, H, W)        NCDHW block (no wrapper transpose)
    # wb_ref:    (KH, Cin*W, Cout*W)        banded weights, bf16, resident
    # y_ref:     (Bn, Bd, H, Cout*W)        conv output, channel-major lanes
    # stats_ref: (1, 1, 1, 2*Cout*W)        per-lane [sum | sum_sq] partials
    # xp_ref:    (Bn*Bd, H+KH-1, Cin*W)     scratch with 2-row vertical halo
    bn_, cin, bd, h, w = x_ref.shape
    kh, k, ol = wb_ref.shape
    pad = kh // 2
    nbd = bn_ * bd

    # Zero only the halo rows (interior writes never touch them).  Done every
    # step (cheap: 2*pad rows) instead of once under pl.when(step == 0) so it
    # is correct when the parallel grid is sharded across TensorCores.
    if pad:
        zrow = jnp.zeros((nbd, pad, k), xp_ref.dtype)
        xp_ref[:, 0:pad, :] = zrow
        xp_ref[:, pad + h:pad + h + pad, :] = zrow

    # In-kernel interleave: NCDHW block -> channel-major lanes [ci, w].
    for b in range(bn_):
        for ci in range(cin):
            xp_ref[b * bd:(b + 1) * bd, pad:pad + h, ci * w:(ci + 1) * w] = (
                x_ref[b, ci].astype(xp_ref.dtype))

    # KH lane-dense MXU matmuls with M = Bn*Bd*H rows; bf16 operands,
    # float32 accumulation.
    m = nbd * h
    acc = jnp.zeros((m, ol), jnp.float32)
    for dy in range(kh):
        lhs = xp_ref[:, dy:dy + h, :].reshape(m, k).astype(jnp.bfloat16)
        acc = acc + jnp.dot(lhs, wb_ref[dy], preferred_element_type=jnp.float32)

    y_ref[...] = acc.reshape(bn_, bd, h, ol).astype(y_ref.dtype)

    # BF_BN partial statistics, single lane-dense store (wrapper folds W, Cout).
    s1 = jnp.sum(acc, axis=0, keepdims=True)            # (1, Cout*W)
    s2 = jnp.sum(acc * acc, axis=0, keepdims=True)       # (1, Cout*W)
    stats_ref[...] = jnp.concatenate([s1, s2], axis=1).reshape(1, 1, 1, 2 * ol)


def _conv_bn_stats(x, w_hwio):
    """x: (N, Cin, D, H, W) NCDHW -> y_mid (N, D, H, Cout*W), lane_stats (2*Cout*W,)."""
    N, Cin, D, H, W = x.shape
    KH, KW, _, Cout = w_hwio.shape
    K = Cin * W
    OL = Cout * W

    wb = _build_banded_weights(w_hwio, W).astype(jnp.bfloat16)
    Bn, Bd = _pick_blocks(N, D, H, max_rows=256)   # 256x128 f32 acc = 32 vregs
    gi, gj = N // Bn, D // Bd

    y, part = pl.pallas_call(
        _conv_stats_kernel,
        out_shape=(
            jax.ShapeDtypeStruct((N, D, H, OL), x.dtype),
            jax.ShapeDtypeStruct((gi, gj, 1, 2 * OL), jnp.float32),
        ),
        grid=(gi, gj),
        in_specs=[
            pl.BlockSpec((Bn, Cin, Bd, H, W), lambda i, j: (i, 0, j, 0, 0)),
            pl.BlockSpec((KH, K, OL), lambda i, j: (0, 0, 0)),
        ],
        out_specs=(
            pl.BlockSpec((Bn, Bd, H, OL), lambda i, j: (i, j, 0, 0)),
            pl.BlockSpec((1, 1, 1, 2 * OL), lambda i, j: (i, j, 0, 0)),
        ),
        scratch_shapes=[pltpu.VMEM((Bn * Bd, H + KH - 1, K), x.dtype)],
        compiler_params=pltpu.CompilerParams(
            dimension_semantics=("parallel", "parallel")),
    )(x, wb)
    lane_stats = jnp.sum(part, axis=(0, 1, 2))   # (2*Cout*W,) tiny wrapper reduce
    return y, lane_stats


# ----------------------------------------------------------------------------
# Kernel 2: per-channel scale (BF_BN * gamma) + ReLU (+ residual),
#           writes the NCDHW output directly.
# ----------------------------------------------------------------------------
def _finalize_kernel(y_ref, s_ref, o_ref, *, relu):
    bn_, cout, bd, h, w = o_ref.shape
    srow = s_ref[...]                                   # (1, Cout*W)
    for b in range(bn_):
        z = y_ref[b].astype(jnp.float32) * srow         # lane-dense (Bd,H,Cout*W)
        if relu:
            z = jnp.maximum(z, 0.0)
        for co in range(cout):                          # planar NCDHW store
            o_ref[b, co, :, :, :] = z[:, :, co * w:(co + 1) * w].astype(o_ref.dtype)


def _finalize_res_kernel(y_ref, s_ref, x_ref, o_ref, *, relu):
    bn_, cout, bd, h, w = o_ref.shape
    srow = s_ref[...]
    for b in range(bn_):
        z = y_ref[b].astype(jnp.float32) * srow
        if relu:
            z = jnp.maximum(z, 0.0)
        for co in range(cout):
            o_ref[b, co, :, :, :] = (
                z[:, :, co * w:(co + 1) * w]
                + x_ref[b, co].astype(jnp.float32)).astype(o_ref.dtype)


def _apply_bn_act(y_mid, scale_row, N, Cout, D, H, W, out_dtype, x=None, relu=True):
    OL = Cout * W
    # Kernel 2 is pure elementwise: give it its own (larger) block cap.
    Bn, Bd = _pick_blocks(N, D, H, max_rows=1024)
    gi, gj = N // Bn, D // Bd
    y_spec = pl.BlockSpec((Bn, Bd, H, OL), lambda i, j: (i, j, 0, 0))
    s_spec = pl.BlockSpec((1, OL), lambda i, j: (0, 0))
    o_spec = pl.BlockSpec((Bn, Cout, Bd, H, W), lambda i, j: (i, 0, j, 0, 0))
    if x is None:
        kernel = functools.partial(_finalize_kernel, relu=relu)
        in_specs, args = [y_spec, s_spec], (y_mid, scale_row)
    else:
        Cin = x.shape[1]
        x_spec = pl.BlockSpec((Bn, Cin, Bd, H, W), lambda i, j: (i, 0, j, 0, 0))
        kernel = functools.partial(_finalize_res_kernel, relu=relu)
        in_specs, args = [y_spec, s_spec, x_spec], (y_mid, scale_row, x)
    return pl.pallas_call(
        kernel,
        out_shape=jax.ShapeDtypeStruct((N, Cout, D, H, W), out_dtype),
        grid=(gi, gj),
        in_specs=in_specs,
        out_specs=o_spec,
        compiler_params=pltpu.CompilerParams(
            dimension_semantics=("parallel", "parallel")),
    )(*args)


# ----------------------------------------------------------------------------
# Conv.forward
# ----------------------------------------------------------------------------
def conv_block_forward(x, w_hwio, gamma=None, *, activation="relu",
                       batchnorm=True, residual=False):
    """x: (N, Cin, D, H, W); w_hwio: (KH, KW, Cin, Cout) (torch weight[co,ci,0,dy,dx])."""
    N, Cin, D, H, W = x.shape
    KH, KW, cin_w, Cout = w_hwio.shape
    assert cin_w == Cin and KH % 2 == 1 and KW % 2 == 1
    OL = Cout * W

    # conv + fused BN partial stats (single pass over the activations)
    y_mid, lane_stats = _conv_bn_stats(x, w_hwio)

    # BF_BN training-mode scale: 1 / sqrt(max(var, 1e-5)) per channel.
    if batchnorm:
        count = N * D * H * W
        s1 = lane_stats[:OL].reshape(Cout, W).sum(axis=1)
        s2 = lane_stats[OL:].reshape(Cout, W).sum(axis=1)
        mean = s1 / count
        var = s2 / count - mean * mean                  # unbiased=False
        scale = 1.0 / jnp.sqrt(jnp.maximum(var, 1e-5))
        # TODO(synk): running_sd EMA buffer update (side effect) not reproduced.
    else:
        scale = jnp.ones((Cout,), jnp.float32)
    if gamma is not None:
        scale = scale * gamma.astype(jnp.float32)
    scale_row = jnp.repeat(scale, W).reshape(1, OL)     # channel-major lanes

    relu = (activation == "relu")
    if residual:
        assert Cin == Cout, "residual requires in_channels == out_channels"
        return _apply_bn_act(y_mid, scale_row, N, Cout, D, H, W, x.dtype,
                             x=x, relu=relu)
    return _apply_bn_act(y_mid, scale_row, N, Cout, D, H, W, x.dtype, relu=relu)


# ----------------------------------------------------------------------------
# Pure-JAX reference (for correctness check)
# ----------------------------------------------------------------------------
def conv_block_reference(x, w_hwio, gamma=None, *, activation="relu",
                         batchnorm=True, residual=False):
    N, Cin, D, H, W = x.shape
    KH, KW, _, Cout = w_hwio.shape
    x2 = jnp.transpose(x, (0, 2, 3, 4, 1)).reshape(N * D, H, W, Cin)
    y = jax.lax.conv_general_dilated(
        x2, w_hwio, window_strides=(1, 1),
        padding=((KH // 2, KH // 2), (KW // 2, KW // 2)),
        dimension_numbers=("NHWC", "HWIO", "NHWC"),
        precision=jax.lax.Precision.HIGHEST)
    y = jnp.transpose(y.reshape(N, D, H, W, Cout), (0, 4, 1, 2, 3))  # NCDHW
    if batchnorm:
        var = jnp.var(y, axis=(0, 2, 3, 4), keepdims=True)
        y = y / jnp.sqrt(jnp.maximum(var, 1e-5))
    if gamma is not None:
        y = y * gamma.reshape(1, Cout, 1, 1, 1)
    if activation == "relu":
        y = jnp.maximum(y, 0.0)
    if residual:
        y = x + y
    return y


if __name__ == "__main__":
    # Conv(in_channels=4, out_channels=8, kernel_size=3), input (2, 4, 4, 16, 16)
    key = jax.random.PRNGKey(0)
    kx, kw = jax.random.split(key)

    in_channels, out_channels = 4, 8
    N, D, H, W = 2, 4, 16, 16

    x = jax.random.normal(kx, (N, in_channels, D, H, W), dtype=jnp.float32)
    # Conv3d weight is (Cout, Cin, 1, 3, 3) with kaiming_normal_(fan_in) in torch;
    # stored here directly in HWIO (3, 3, Cin, Cout) layout.
    fan_in = in_channels * 3 * 3
    w = jax.random.normal(kw, (3, 3, in_channels, out_channels),
                          dtype=jnp.float32) * (2.0 / fan_in) ** 0.5
    gamma = jnp.ones((out_channels,), jnp.float32)   # BF_BN learnable_sd init

    out = conv_block_forward(x, w, gamma=gamma, activation="relu",
                             batchnorm=True, residual=False)
    out = jax.block_until_ready(out)

    ref = jax.block_until_ready(
        conv_block_reference(x, w, gamma=gamma, activation="relu",
                             batchnorm=True, residual=False))
    assert out.shape == (N, out_channels, D, H, W), out.shape
    max_diff = float(jnp.max(jnp.abs(out - ref)))
    assert max_diff < 5e-2, f"mismatch vs reference: {max_diff}"

    print("KERNEL_OK")
</pallas_src>

<mosaic_0001>
module attributes {stable_mosaic.version = 11 : i64} {
  func.func @_conv_stats_kernel(%arg0: i32, %arg1: i32, %arg2: memref<1x4x4x16x16xf32, #tpu.memory_space<vmem>>, %arg3: memref<3x64x128xbf16, #tpu.memory_space<vmem>>, %arg4: memref<1x4x16x128xf32, #tpu.memory_space<vmem>>, %arg5: memref<1x1x1x256xf32, #tpu.memory_space<vmem>>, %arg6: memref<4x18x64xf32, #tpu.memory_space<vmem>>) attributes {dimension_semantics = [#tpu.dimension_semantics<parallel>, #tpu.dimension_semantics<parallel>], iteration_bounds = array<i64: 2, 1>, scalar_prefetch = 0 : i64, scratch_operands = 1 : i64, tpu.core_type = #tpu.core_type<tc>, window_params = [{transform_indices = @transform_0, window_bounds = array<i64: 1, 4, 4, 16, 16>}, {pipeline_mode = #tpu.pipeline_mode<synchronous>, transform_indices = @transform_1, window_bounds = array<i64: 3, 64, 128>}, {transform_indices = @transform_2, window_bounds = array<i64: 1, 4, 16, 128>}, {transform_indices = @transform_3, window_bounds = array<i64: 1, 1, 1, 256>}]} {
    %cst = arith.constant 0.000000e+00 : f32
    %0 = vector.broadcast %cst : f32 to vector<4x1x64xf32>
    %c0 = arith.constant 0 : index
    %c0_0 = arith.constant 0 : index
    %c0_1 = arith.constant 0 : index
    %1 = vector.load %arg6[%c0, %c0_0, %c0_1] : memref<4x18x64xf32, #tpu.memory_space<vmem>>, vector<4x1x64xf32>
    tpu.vector_store %arg6[%c0, %c0_0, %c0_1], %0 {strides = array<i32>} : memref<4x18x64xf32, #tpu.memory_space<vmem>>, vector<4x1x64xf32>,
    %c0_2 = arith.constant 0 : index
    %c17 = arith.constant 17 : index
    %c0_3 = arith.constant 0 : index
    %2 = vector.load %arg6[%c0_2, %c17, %c0_3] : memref<4x18x64xf32, #tpu.memory_space<vmem>>, vector<4x1x64xf32>
    tpu.vector_store %arg6[%c0_2, %c17, %c0_3], %0 {strides = array<i32>} : memref<4x18x64xf32, #tpu.memory_space<vmem>>, vector<4x1x64xf32>,
    %c0_4 = arith.constant 0 : index
    %c0_5 = arith.constant 0 : index
    %c0_6 = arith.constant 0 : index
    %c0_7 = arith.constant 0 : index
    %c0_8 = arith.constant 0 : index
    %3 = vector.load %arg2[%c0_4, %c0_5, %c0_6, %c0_7, %c0_8] : memref<1x4x4x16x16xf32, #tpu.memory_space<vmem>>, vector<1x1x4x16x16xf32>
    %4 = vector.shape_cast %3 : vector<1x1x4x16x16xf32> to vector<4x16x16xf32>
    %c0_9 = arith.constant 0 : index
    %c1 = arith.constant 1 : index
    %c0_10 = arith.constant 0 : index
    %5 = vector.load %arg6[%c0_9, %c1, %c0_10] : memref<4x18x64xf32, #tpu.memory_space<vmem>>, vector<4x16x16xf32>
    tpu.vector_store %arg6[%c0_9, %c1, %c0_10], %4 {strides = array<i32>} : memref<4x18x64xf32, #tpu.memory_space<vmem>>, vector<4x16x16xf32>,
    %c0_11 = arith.constant 0 : index
    %c1_12 = arith.constant 1 : index
    %c0_13 = arith.constant 0 : index
    %c0_14 = arith.constant 0 : index
    %c0_15 = arith.constant 0 : index
    %6 = vector.load %arg2[%c0_11, %c1_12, %c0_13, %c0_14, %c0_15] : memref<1x4x4x16x16xf32, #tpu.memory_space<vmem>>, vector<1x1x4x16x16xf32>
    %7 = vector.shape_cast %6 : vector<1x1x4x16x16xf32> to vector<4x16x16xf32>
    %c0_16 = arith.constant 0 : index
    %c1_17 = arith.constant 1 : index
    %c16 = arith.constant 16 : index
    %8 = vector.load %arg6[%c0_16, %c1_17, %c16] : memref<4x18x64xf32, #tpu.memory_space<vmem>>, vector<4x16x16xf32>
    tpu.vector_store %arg6[%c0_16, %c1_17, %c16], %7 {strides = array<i32>} : memref<4x18x64xf32, #tpu.memory_space<vmem>>, vector<4x16x16xf32>,
    %c0_18 = arith.constant 0 : index
    %c2 = arith.constant 2 : index
    %c0_19 = arith.constant 0 : index
    %c0_20 = arith.constant 0 : index
    %c0_21 = arith.constant 0 : index
    %9 = vector.load %arg2[%c0_18, %c2, %c0_19, %c0_20, %c0_21] : memref<1x4x4x16x16xf32, #tpu.memory_space<vmem>>, vector<1x1x4x16x16xf32>
    %10 = vector.shape_cast %9 : vector<1x1x4x16x16xf32> to vector<4x16x16xf32>
    %c0_22 = arith.constant 0 : index
    %c1_23 = arith.constant 1 : index
    %c32 = arith.constant 32 : index
    %11 = vector.load %arg6[%c0_22, %c1_23, %c32] : memref<4x18x64xf32, #tpu.memory_space<vmem>>, vector<4x16x16xf32>
    tpu.vector_store %arg6[%c0_22, %c1_23, %c32], %10 {strides = array<i32>} : memref<4x18x64xf32, #tpu.memory_space<vmem>>, vector<4x16x16xf32>,
    %c0_24 = arith.constant 0 : index
    %c3 = arith.constant 3 : index
    %c0_25 = arith.constant 0 : index
    %c0_26 = arith.constant 0 : index
    %c0_27 = arith.constant 0 : index
    %12 = vector.load %arg2[%c0_24, %c3, %c0_25, %c0_26, %c0_27] : memref<1x4x4x16x16xf32, #tpu.memory_space<vmem>>, vector<1x1x4x16x16xf32>
    %13 = vector.shape_cast %12 : vector<1x1x4x16x16xf32> to vector<4x16x16xf32>
    %c0_28 = arith.constant 0 : index
    %c1_29 = arith.constant 1 : index
    %c48 = arith.constant 48 : index
    %14 = vector.load %arg6[%c0_28, %c1_29, %c48] : memref<4x18x64xf32, #tpu.memory_space<vmem>>, vector<4x16x16xf32>
    tpu.vector_store %arg6[%c0_28, %c1_29, %c48], %13 {strides = array<i32>} : memref<4x18x64xf32, #tpu.memory_space<vmem>>, vector<4x16x16xf32>,
    %cst_30 = arith.constant 0.000000e+00 : f32
    %15 = vector.broadcast %cst_30 : f32 to vector<64x128xf32>
    %c0_31 = arith.constant 0 : index
    %c0_32 = arith.constant 0 : index
    %c0_33 = arith.constant 0 : index
    %16 = vector.load %arg6[%c0_31, %c0_32, %c0_33] : memref<4x18x64xf32, #tpu.memory_space<vmem>>, vector<4x16x64xf32>
    %17 = vector.shape_cast %16 : vector<4x16x64xf32> to vector<64x64xf32>
    %18 = arith.truncf %17 : vector<64x64xf32> to vector<64x64xbf16>
    %c0_34 = arith.constant 0 : index
    %c0_35 = arith.constant 0 : index
    %c0_36 = arith.constant 0 : index
    %19 = vector.load %arg3[%c0_34, %c0_35, %c0_36] : memref<3x64x128xbf16, #tpu.memory_space<vmem>>, vector<1x64x128xbf16>
    %20 = vector.shape_cast %19 : vector<1x64x128xbf16> to vector<64x128xbf16>
    %cst_37 = arith.constant dense<0.000000e+00> : vector<64x128xf32>
    %21 = tpu.matmul %18, %20, %cst_37 {dimension_numbers = #tpu.dot_dimension_numbers<[1], [0], [0], [1], [0, 0, 1, 1], [], []>} : vector<64x64xbf16>, vector<64x128xbf16>, vector<64x128xf32> -> vector<64x128xf32>
    %22 = arith.addf %15, %21 : vector<64x128xf32>
    %c0_38 = arith.constant 0 : index
    %c1_39 = arith.constant 1 : index
    %c0_40 = arith.constant 0 : index
    %23 = vector.load %arg6[%c0_38, %c1_39, %c0_40] : memref<4x18x64xf32, #tpu.memory_space<vmem>>, vector<4x16x64xf32>
    %24 = vector.shape_cast %23 : vector<4x16x64xf32> to vector<64x64xf32>
    %25 = arith.truncf %24 : vector<64x64xf32> to vector<64x64xbf16>
    %c1_41 = arith.constant 1 : index
    %c0_42 = arith.constant 0 : index
    %c0_43 = arith.constant 0 : index
    %26 = vector.load %arg3[%c1_41, %c0_42, %c0_43] : memref<3x64x128xbf16, #tpu.memory_space<vmem>>, vector<1x64x128xbf16>
    %27 = vector.shape_cast %26 : vector<1x64x128xbf16> to vector<64x128xbf16>
    %cst_44 = arith.constant dense<0.000000e+00> : vector<64x128xf32>
    %28 = tpu.matmul %25, %27, %cst_44 {dimension_numbers = #tpu.dot_dimension_numbers<[1], [0], [0], [1], [0, 0, 1, 1], [], []>} : vector<64x64xbf16>, vector<64x128xbf16>, vector<64x128xf32> -> vector<64x128xf32>
    %29 = arith.addf %22, %28 : vector<64x128xf32>
    %c0_45 = arith.constant 0 : index
    %c2_46 = arith.constant 2 : index
    %c0_47 = arith.constant 0 : index
    %30 = vector.load %arg6[%c0_45, %c2_46, %c0_47] : memref<4x18x64xf32, #tpu.memory_space<vmem>>, vector<4x16x64xf32>
    %31 = vector.shape_cast %30 : vector<4x16x64xf32> to vector<64x64xf32>
    %32 = arith.truncf %31 : vector<64x64xf32> to vector<64x64xbf16>
    %c2_48 = arith.constant 2 : index
    %c0_49 = arith.constant 0 : index
    %c0_50 = arith.constant 0 : index
    %33 = vector.load %arg3[%c2_48, %c0_49, %c0_50] : memref<3x64x128xbf16, #tpu.memory_space<vmem>>, vector<1x64x128xbf16>
    %34 = vector.shape_cast %33 : vector<1x64x128xbf16> to vector<64x128xbf16>
    %cst_51 = arith.constant dense<0.000000e+00> : vector<64x128xf32>
    %35 = tpu.matmul %32, %34, %cst_51 {dimension_numbers = #tpu.dot_dimension_numbers<[1], [0], [0], [1], [0, 0, 1, 1], [], []>} : vector<64x64xbf16>, vector<64x128xbf16>, vector<64x128xf32> -> vector<64x128xf32>
    %36 = arith.addf %29, %35 : vector<64x128xf32>
    %37 = vector.shape_cast %36 : vector<64x128xf32> to vector<1x4x16x128xf32>
    %c0_52 = arith.constant 0 : index
    %c0_53 = arith.constant 0 : index
    %c0_54 = arith.constant 0 : index
    %c0_55 = arith.constant 0 : index
    %38 = vector.load %arg4[%c0_52, %c0_53, %c0_54, %c0_55] : memref<1x4x16x128xf32, #tpu.memory_space<vmem>>, vector<1x4x16x128xf32>
    tpu.vector_store %arg4[%c0_52, %c0_53, %c0_54, %c0_55], %37 {strides = array<i32>} : memref<1x4x16x128xf32, #tpu.memory_space<vmem>>, vector<1x4x16x128xf32>,
    %cst_56 = arith.constant dense<0.000000e+00> : vector<128xf32>
    %39 = vector.multi_reduction <add>, %36, %cst_56 [0] : vector<64x128xf32> to vector<128xf32>
    %40 = vector.shape_cast %39 : vector<128xf32> to vector<1x128xf32>
    %41 = arith.mulf %36, %36 : vector<64x128xf32>
    %cst_57 = arith.constant dense<0.000000e+00> : vector<128xf32>
    %42 = vector.multi_reduction <add>, %41, %cst_57 [0] : vector<64x128xf32> to vector<128xf32>
    %43 = vector.shape_cast %42 : vector<128xf32> to vector<1x128xf32>
    %44 = tpu.concatenate %40, %43 in 1 : vector<1x128xf32>, vector<1x128xf32> -> vector<1x256xf32>
    %45 = vector.shape_cast %44 : vector<1x256xf32> to vector<1x1x1x256xf32>
    %c0_58 = arith.constant 0 : index
    %c0_59 = arith.constant 0 : index
    %c0_60 = arith.constant 0 : index
    %c0_61 = arith.constant 0 : index
    %46 = vector.load %arg5[%c0_58, %c0_59, %c0_60, %c0_61] : memref<1x1x1x256xf32, #tpu.memory_space<vmem>>, vector<1x1x1x256xf32>
    tpu.vector_store %arg5[%c0_58, %c0_59, %c0_60, %c0_61], %45 {strides = array<i32>} : memref<1x1x1x256xf32, #tpu.memory_space<vmem>>, vector<1x1x1x256xf32>,
    return
  }
  func.func @transform_0(%arg0: i32, %arg1: i32) -> (i32, i32, i32, i32, i32) {
    %c0_i32 = arith.constant 0 : i32
    %c0_i32_0 = arith.constant 0 : i32
    %c0_i32_1 = arith.constant 0 : i32
    %c0_i32_2 = arith.constant 0 : i32
    return %arg0, %c0_i32, %arg1, %c0_i32_0, %c0_i32_1 : i32, i32, i32, i32, i32
  }
  func.func @transform_1(%arg0: i32, %arg1: i32) -> (i32, i32, i32) {
    %c0_i32 = arith.constant 0 : i32
    %c0_i32_0 = arith.constant 0 : i32
    %c0_i32_1 = arith.constant 0 : i32
    %c0_i32_2 = arith.constant 0 : i32
    return %c0_i32, %c0_i32_0, %c0_i32_1 : i32, i32, i32
  }
  func.func @transform_2(%arg0: i32, %arg1: i32) -> (i32, i32, i32, i32) {
    %c0_i32 = arith.constant 0 : i32
    %c0_i32_0 = arith.constant 0 : i32
    %c0_i32_1 = arith.constant 0 : i32
    return %arg0, %arg1, %c0_i32, %c0_i32_0 : i32, i32, i32, i32
  }
  func.func @transform_3(%arg0: i32, %arg1: i32) -> (i32, i32, i32, i32) {
    %c0_i32 = arith.constant 0 : i32
    %c0_i32_0 = arith.constant 0 : i32
    %c0_i32_1 = arith.constant 0 : i32
    return %arg0, %arg1, %c0_i32, %c0_i32_0 : i32, i32, i32, i32
  }
}

</mosaic_0001>

<bundles_post_ra>
// kernel: tpu_custom_call.1
= control target key start
LH: loop header
LB: loop body
LE: loop exit
PB: predicated region body
PF: predicated region fallthrough
CT: control target
= control target key end

     0   :  { %9 = vsyncpa [#allocation4], 0  ;;  %s1871_s0 = inlined_call_operand.hbm [shape: f32[2,4,4,16,16], index: 0, kind: input, shape index: {}]   ;;  %s1872_s1 = inlined_call_operand.hbm [shape: bf16[3,64,128], index: 1, kind: input, shape index: {}]   ;;  %s1873_s2 = inlined_call_operand.hbm [shape: f32[2,4,16,128], index: 2, kind: output, shape index: {0}]   ;;  %s1874_s3 = inlined_call_operand.hbm [shape: f32[2,1,1,256], index: 3, kind: output, shape index: {1}]  }
   0x1   :  { %11 = vsyncpa [#allocation4 + $0x1], 0 }
   0x2   :  { %12 = vsyncpa [#allocation7], 0 }
   0x3   :  { %13 = vsyncpa [#allocation5], 0 }
   0x4   :  { %15 = vsyncpa [#allocation5 + $0x1], 0 }
   0x5   :  { %16 = vsyncpa [#allocation10], 0 }
   0x6   :  { %18 = vsyncpa [#allocation10 + $0x1], 0  ;;  %s1506_s12 = smov 0   ;;  %s1508_s13 = smov 0  }
   0x7   :  { %s1510_s14 = smov 0   ;;  %s1512_s15 = smov 0  }
   0x8   :  { %s1514_s16 = smov 0   ;;  %s1516_s17 = smov 0  }
   0x9 LB: > { %s1024_s18 = sadd.s32 4294967295, %s1469_s17   ;;  %s1025_s19 = sadd.s32 4294967294, %s1469_s17   ;;  %s1469_s17 = sphi %s1516_s17, %s24_s17   ;;  %s1465_s16 = sphi %s1514_s16, %s1898_s16   ;;  %s1461_s15 = sphi %s1512_s15, %s1897_s15   ;;  %s1457_s14 = sphi %s1510_s14, %s1896_s14   ;;  %s1453_s13 = sphi %s1508_s13, %s1895_s13   ;;  %s1449_s12 = sphi %s1506_s12, %s1894_s12  }
   0xa   : > { %p58_p0 = scmp.ne.s32.totalorder %s1453_s13, %s1449_s12  ;;  %p1540_p1 = scmp.eq.s32.totalorder %s1024_s18, 0 }
   0xb   : > { %p1544_p2 = scmp.eq.s32.totalorder %s1024_s18, 1  ;;  %p111_p3 = scmp.eq.s32.totalorder %s1025_s19, 1 }
   0xc   : > { %s1879_s20 = scalar_select %p1540_p1, 1, 0 }
   0xd   : > { %s1880_s21 = scalar_select %p1544_p2, 1, 0 }
   0xe   : > { %p1550_p4 = por %p1540_p1, %p58_p0  ;;  %p1026_p5 = scmp.ge.s32.totalorder %s1469_s17, 1 }
   0xf   : > { %p1555_p6 = por %p111_p3, %p58_p0  ;;  %p146_p7 = scmp.lt.s32.totalorder %s1469_s17, 3 }
  0x10   : > { %s1881_s22 = scalar_select %p1550_p4, 1, 0 }
  0x11   : > { %s1882_s23 = scalar_select %p1555_p6, 1, 0 }
  0x12   : > { %p1560_p8 = pnand %p1026_p5, %p146_p7  ;;  %s1471_s25 = smov [#allocation6]  }
  0x13   : > { %s158_s26 = sshll.u32 %s1471_s25, 4  ;;  %s36_s28 = sadd.s32 1, %s1465_s16  ;;  %s159_s26 = int_to_ptr.vmem [resolvable:$true] %s158_s26 }
  0x14   : > { %s1883_s24 = scalar_select %p1560_p8, 1, 0 }
  0x15   : > { %p1202_p9 = pneg %p1560_p8  ;;  %s1293_s4 = scalar_lea.hbm %s1872_s1, 1536 }
  0x16   : > { %p1294_p12 = scmp.ne.s32.totalorder %s1872_s1, %s1293_s4  ;;  %p1300_p5 = scmp.lt.u32.totalorder %s1293_s4, %s1872_s1 }
  0x17   : > { %p1569_p11 = pnand %p1202_p9, %p1540_p1 }
  0x19   : > { %p1295_p13 = pneg %p1569_p11 }
  0x1b   : > { %p1296_p0 = pnand %p1295_p13, %p1294_p12 }
  0x1d   : > { %p1297_p3 = pneg %p1296_p0 }
  0x1f   : > { %p1302_p7 = pnand %p1300_p5, %p1297_p3 }
  0x21   : > { %1305 = shalt.err (!%p1302_p7)
}
  0x22   : > { %s1306_s9 = scalar_lea.vmem %s159_s26, 1536  ;;  %p1314_p1 = scmp.lt.s32.totalorder %s159_s26, %s159_s26 }
  0x23   : > { %p1307_p9 = scmp.ne.s32.totalorder %s159_s26, %s1306_s9  ;;  %p1315_p4 = scmp.lt.s32.totalorder %s1306_s9, %s1306_s9 }
  0x25   : > { %p1309_p10 = pnand %p1307_p9, %p1295_p13  ;;  %p1316_p8 = por %p1315_p4, %p1314_p1 }
  0x27   : > { %p1310_p6 = pneg %p1309_p10 }
  0x29   : > { %p1317_p2 = pnand %p1316_p8, %p1310_p6 }
  0x2b   : > { %1320 = shalt.err (!%p1317_p2)
}
  0x2c   : > { %s1472_s10 = smov 64   ;;  %s1473_s11 = smov 4  }
  0x2d   : > { %1205 = dma.hbm_to_vmem [thread:$0]  (!%p1569_p11), %s1872_s1, 1536, %s159_s26, [#allocation7], %s1472_s10, %s1472_s10, %s1473_s11  }
  0x2e   : > { %p38_p1 = scmp.ge.s32.totalorder %s36_s28, 2  ;;  %s45_s25 = sadd.s32 1, %s1457_s14 }
  0x2f   : > { %p52_p2 = scmp.ne.s32.totalorder %s1457_s14, %s1453_s13  ;;  %p53_p4 = scmp.eq.s32.totalorder %s1469_s17, 0 }
  0x30   : > { %s1900_s28 = smov (%p38_p1, %s36_s28), 0  ;;  %p1886_p8 = scmp.ne.s32.totalorder %s1880_s21, 0 }
  0x31   : > { %p1596_p6 = por %p53_p4, %p52_p2  ;;  %s40_s27 = ssub.s32 %s1465_s16, %s1900_s28 }
  0x32   : > { %p1602_p10 = por %p1886_p8, %p52_p2  ;;  %p1218_p12 = scmp.lt.s32.totalorder %s1469_s17, 2 }
  0x33   : > { %p43_p11 = scmp.eq.s32.totalorder %s40_s27, 0  ;;  %s172_s26 = sand.u32 1, %s1457_s14  }
  0x34   : > { %s1029_s4 = sshll.u32 %s172_s26, 8  ;;  %s1093_s6 = sshll.u32 %s1465_s16, 12 }
  0x35   : > { %s1611_s5 = scalar_select %p43_p11, %s1457_s14, %s45_s25  }
  0x36   : > { %s1617_s9 = scalar_lea.hbm %s1871_s0, %s1093_s6  ;;  %s176_s21 = scalar_lea.vmem [#allocation3], %s1029_s4 }
  0x37   : > { %s186_s10 = sshll.u32 %s176_s21, 4  ;;  %p1623_p13 = pnand %p1218_p12, %p1596_p6  ;;  %s1619_s10 = int_to_ptr.vmem [resolvable:$true] %s186_s10 }
  0x38   : > { %s1627_s18 = scalar_lea.sflag [#allocation4], %s172_s26  ;;  %s1321_s19 = scalar_lea.hbm %s1617_s9, 4096 }
  0x39   : > { %p1322_p0 = scmp.ne.s32.totalorder %s1617_s9, %s1321_s19  ;;  %p1323_p3 = pneg %p1623_p13 }
  0x3a   : > { %s1326_s29 = scalar_lea.hbm %s1871_s0, 8192  ;;  %p1327_p9 = scmp.lt.u32.totalorder %s1617_s9, %s1871_s0 }
  0x3b   : > { %p1324_p5 = pnand %p1323_p3, %p1322_p0  ;;  %p1328_p1 = scmp.lt.u32.totalorder %s1326_s29, %s1321_s19 }
  0x3c   : > { %p1330_p4 = scmp.lt.u32.totalorder %s1321_s19, %s1617_s9 }
  0x3d   : > { %p1325_p7 = pneg %p1324_p5  ;;  %p1329_p2 = por %p1328_p1, %p1327_p9 }
  0x3f   : > { %p1331_p6 = por %p1330_p4, %p1329_p2 }
  0x41   : > { %p1332_p8 = pnand %p1331_p6, %p1325_p7 }
  0x43   : > { %1335 = shalt.err (!%p1332_p8)
}
  0x44   : > { %s1336_s26 = scalar_lea.vmem %s1619_s10, 4096  ;;  %s1474_s7 = smov [#allocation3]  }
  0x45   : > { %p1337_p12 = scmp.ne.s32.totalorder %s1619_s10, %s1336_s26  ;;  %s1341_s8 = sshll.u32 %s1474_s7, 4  ;;  %s1342_s8 = int_to_ptr.vmem [resolvable:$false] %s1341_s8 }
  0x46   : > { %s1343_s21 = scalar_lea.vmem %s1342_s8, 8192  ;;  %p1344_p5 = scmp.lt.s32.totalorder %s1619_s10, %s1342_s8 }
  0x47   : > { %p1339_p11 = pnand %p1337_p12, %p1323_p3  ;;  %p1345_p9 = scmp.lt.s32.totalorder %s1343_s21, %s1336_s26 }
  0x49   : > { %p1340_p0 = pneg %p1339_p11  ;;  %p1346_p1 = por %p1345_p9, %p1344_p5 }
  0x4b   : > { %p1347_p2 = pnand %p1346_p1, %p1340_p0 }
  0x4d   : > { %1350 = shalt.err (!%p1347_p2)
}
  0x4e   : > { %s1475_s19 = smov 128   ;;  %s1476_s25 = smov 8  }
  0x4f   : > { %1209 = dma.hbm_to_vmem [thread:$0]  (!%p1623_p13), %s1617_s9, 4096, %s1619_s10, %s1627_s18, %s1475_s19, %s1475_s19, %s1476_s25  }
  0x50   : > { %p1889_p3 = scmp.ne.s32.totalorder %s1883_s24, 0 }
  0x51   : > { %s1658_s27 = sand.u32 (!%p1889_p3), 1, %s1453_s13   ;;  %p1890_p7 = scmp.ne.s32.totalorder (!%p1889_p3), %s1881_s22, 0 }
  0x52   : > { %198 = sbr.rel (%p1889_p3) target bundleno = 548 (0x224), region = 28  ;;  %s1033_s29 = sshll.u32 (!%p1889_p3), %s1658_s27, 8 }
  0x53   : > { %s201_s4 = scalar_lea.sflag (!%p1889_p3), [#allocation4], %s1658_s27  ;;  %s1662_s6 = scalar_lea.vmem (!%p1889_p3), [#allocation3], %s1033_s29 }
  0x59   : > { %1432 = dma.done.wait (%p1890_p7), %s201_s4, 4096  }
  0x5a   : > { %1434 = vsyncadd (%p1890_p7), %s201_s4, 4294963200  ;;  %p1891_p13 = scmp.ne.s32.totalorder %s1879_s20, 0 }
  0x5c   : > { %1436 = dma.done.wait (%p1891_p13), [#allocation7], 1536  }
  0x5d   : > { %1438 = vsyncadd (%p1891_p13), [#allocation7], 4294965760  ;;  %v1039_v0 = vld [vmem:[%s1662_s6 + $0x50] sm:$0xff]  ;;  %v1037_v1 = vld [vmem:[%s1662_s6 + $0x40] sm:$0xff]  ;;  %s1477_s24 = smov 16   ;;  %vm239_vm0 = vcmask 516096  }
  0x5e   : > { %286 = vrot.lane.b32.xlu1 %v1039_v0, %s1477_s24  ;;  %282 = vrot.lane.b32.xlu0 %v1037_v1, %s1477_s24  ;;  %v1040_v2 = vld [vmem:[%s1662_s6 + $0x58] sm:$0xff]  ;;  %v1038_v3 = vld [vmem:[%s1662_s6 + $0x48] sm:$0xff]  ;;  %v1478_v4 = vmov 0.0   ;;  %vm256_vm1 = vcmask 130048   ;;  %s1479_s20 = smov 32   ;;  %v1281_v12 = vld [vmem:[#allocation6 + $0x20] sm:$0xff]  }
  0x5f   : > { %240 = vst.msk [vmem:[#allocation2] sm:$0x1] %vm239_vm0, %v1478_v4  ;;  %241 = vst.msk [vmem:[#allocation2 + $0x18] sm:$0x1] %vm239_vm0, %v1478_v4  ;;  %v1046_v5 = vld [vmem:[%s1662_s6 + $0x88] sm:$0xff]  ;;  %v1045_v6 = vld [vmem:[%s1662_s6 + $0x80] sm:$0xff]  ;;  %1120 = vmatprep.subr.bf16.mxu1 %v1281_v12 }
  0x60   : > { %242 = vst.msk [vmem:[#allocation2 + $0x30] sm:$0x1] %vm239_vm0, %v1478_v4  ;;  %243 = vst.msk [vmem:[#allocation2 + $0x48] sm:$0x1] %vm239_vm0, %v1478_v4  ;;  %v1048_v7 = vld [vmem:[%s1662_s6 + $0x98] sm:$0xff]  ;;  %v1047_v8 = vld [vmem:[%s1662_s6 + $0x90] sm:$0xff]  ;;  %1121 = vmatpush3.bf16.msra.mxu1 %v1281_v12 }
  0x61   : > { %244 = vst.msk [vmem:[#allocation2 + $0x11] sm:$0x1] %vm239_vm0, %v1478_v4  ;;  %245 = vst.msk [vmem:[#allocation2 + $0x29] sm:$0x1] %vm239_vm0, %v1478_v4  ;;  %v250_v9 = vld [vmem:[%s1662_s6 + $0x10] sm:$0xff]  ;;  %v248_v10 = vld [vmem:[%s1662_s6] sm:$0xff] }
  0x62   : > { %246 = vst.msk [vmem:[#allocation2 + $0x41] sm:$0x1] %vm239_vm0, %v1478_v4  ;;  %247 = vst.msk [vmem:[#allocation2 + $0x59] sm:$0x1] %vm239_vm0, %v1478_v4  ;;  %288 = vrot.lane.b32.xlu1 %v1040_v2, %s1477_s24  ;;  %284 = vrot.lane.b32.xlu0 %v1038_v3, %s1477_s24  ;;  %v251_v11 = vld [vmem:[%s1662_s6 + $0x18] sm:$0xff]  ;;  %v249_v13 = vld [vmem:[%s1662_s6 + $0x8] sm:$0xff] }
  0x63   : > { %259 = vst.msk [vmem:[#allocation2 + $0x19] sm:$0xff] %vm256_vm1, %v250_v9  ;;  %257 = vst.msk [vmem:[#allocation2 + $0x1] sm:$0xff] %vm256_vm1, %v248_v10  ;;  %v1282_v14 = vld [vmem:[#allocation6] sm:$0xff]   ;;  %v1054_v15 = vld [vmem:[%s1662_s6 + $0xc8] sm:$0xff]  ;;  %s1480_s22 = smov 48   ;;  %vm306_vm2 = vcmask 261248  }
  0x64   : > { %260 = vst.msk [vmem:[#allocation2 + $0x21] sm:$0xff] %vm256_vm1, %v251_v11  ;;  %258 = vst.msk [vmem:[#allocation2 + $0x9] sm:$0xff] %vm256_vm1, %v249_v13  ;;  %v1053_v16 = vld [vmem:[%s1662_s6 + $0xc0] sm:$0xff]  ;;  %v1283_v17 = vld [vmem:[#allocation6 + $0x28] sm:$0xff]   ;;  %1136 = vmatprep.subr.bf16.mxu0 %v1282_v14  ;;  %vm356_vm3 = vcmask 392448   ;;  %vm406_vm4 = vcmask 523648  }
  0x65   : > { %v1284_v18 = vld [vmem:[#allocation6 + $0x8] sm:$0xff]   ;;  %1122 = vmatprep.subr.bf16.mxu1 %v1283_v17  ;;  %v1285_v19 = vld [vmem:[#allocation6 + $0x30] sm:$0xff]   ;;  %1137 = vmatpush3.bf16.msra.mxu0 %v1282_v14  ;;  %v252_v21 = vld [vmem:[%s1662_s6 + $0x20] sm:$0xff]  ;;  %vm480_vm5 = vcmask 523264   ;;  %s1035_s9 = sshll.u32 %s1658_s27, 6  ;;  %s1094_s18 = sshll.u32 %s1461_s15, 10 }
  0x66   : > { %334 = vrot.lane.b32.xlu1 %v1046_v5, %s1479_s20  ;;  %332 = vrot.lane.b32.xlu0 %v1045_v6, %s1479_s20  ;;  %v253_v20 = vld [vmem:[%s1662_s6 + $0x28] sm:$0xff]  ;;  %v1056_v22 = vld [vmem:[%s1662_s6 + $0xd8] sm:$0xff]  ;;  %v1286_v24 = vld [vmem:[#allocation6 + $0x10] sm:$0xff]   ;;  %261 = vst.msk [vmem:[#allocation2 + $0x31] sm:$0xff] %vm256_vm1, %v252_v21  ;;  %s228_s10 = scalar_lea.vmem [#allocation8], %s1035_s9  ;;  %s1788_s8 = scalar_lea.hbm %s1873_s2, %s1094_s18 }
  0x67   : > { %v1055_v23 = vld [vmem:[%s1662_s6 + $0xd0] sm:$0xff]  ;;  %1138 = vmatprep.subr.bf16.mxu0 %v1284_v18  ;;  %1123 = vmatpush3.bf16.msra.mxu1 %v1283_v17  ;;  %262 = vst.msk [vmem:[#allocation2 + $0x39] sm:$0xff] %vm256_vm1, %v253_v20  ;;  %v1287_v25 = vld [vmem:[#allocation6 + $0x38] sm:$0xff]   ;;  %v1042_v29 = vld [vmem:[%s1662_s6 + $0x68] sm:$0xff]  ;;  %s876_s11 = sshll.u32 %s228_s10, 4  ;;  %s855_s21 = scalar_lea.sflag [#allocation5], %s1658_s27  ;;  %s1782_s11 = int_to_ptr.vmem [resolvable:$true] %s876_s11 }
  0x68   : > { %1124 = vmatprep.subr.bf16.mxu1 %v1285_v19  ;;  %v1288_v26 = vld [vmem:[#allocation6 + $0x18] sm:$0xff]   ;;  %v254_v28 = vld [vmem:[%s1662_s6 + $0x30] sm:$0xff]  ;;  %v1041_v30 = vld [vmem:[%s1662_s6 + $0x60] sm:$0xff]  ;;  %s1351_s19 = scalar_lea.vmem %s1782_s11, 1024  ;;  %s1481_s25 = smov [#allocation8]  }
  0x69   : > { %v255_v27 = vld [vmem:[%s1662_s6 + $0x38] sm:$0xff]  ;;  %1139 = vmatpush3.bf16.msra.mxu0 %v1284_v18  ;;  %263 = vst.msk [vmem:[#allocation2 + $0x49] sm:$0xff] %vm256_vm1, %v254_v28  ;;  %v1043_v32 = vld [vmem:[%s1662_s6 + $0x70] sm:$0xff]  ;;  %v1050_v33 = vld [vmem:[%s1662_s6 + $0xa8] sm:$0xff]  ;;  %p1352_p4 = scmp.ne.s32.totalorder %s1782_s11, %s1351_s19  ;;  %s1355_s29 = sshll.u32 %s1481_s25, 4  ;;  %s1356_s29 = int_to_ptr.vmem [resolvable:$false] %s1355_s29 }
  0x6a   : > { %338 = vrot.lane.b32.xlu1 %v1048_v7, %s1479_s20  ;;  %336 = vrot.lane.b32.xlu0 %v1047_v8, %s1479_s20  ;;  %264 = vst.msk [vmem:[#allocation2 + $0x51] sm:$0xff] %vm256_vm1, %v255_v27  ;;  %v1044_v31 = vld [vmem:[%s1662_s6 + $0x78] sm:$0xff]  ;;  %v1049_v34 = vld [vmem:[%s1662_s6 + $0xa0] sm:$0xff]  ;;  %v1290_v5 = vld [vmem:[#allocation6 + $0x48] sm:$0xff]   ;;  %s1357_s4 = scalar_lea.vmem %s1356_s29, 2048  ;;  %p1358_p12 = scmp.lt.s32.totalorder %s1782_s11, %s1356_s29 }
  0x6b   : > { %1140 = vmatprep.subr.bf16.mxu0 %v1286_v24  ;;  %1125 = vmatpush3.bf16.msra.mxu1 %v1285_v19  ;;  %v1722_v35 = vld [vmem:[#allocation6 + $0x40] sm:$0xff]   ;;  %v1052_v36 = vld [vmem:[%s1662_s6 + $0xb8] sm:$0xff]  ;;  %v1051_v37 = vld [vmem:[%s1662_s6 + $0xb0] sm:$0xff]  ;;  %p1353_p6 = pnand %p1352_p4, %p1602_p10  ;;  %p1359_p11 = scmp.lt.s32.totalorder %s1357_s4, %s1351_s19 }
  0x6c   : > { %1126 = vmatprep.subr.bf16.mxu1 %v1287_v25  ;;  %v1058_v38 = vld [vmem:[%s1662_s6 + $0xe8] sm:$0xff]  ;;  %v1057_v39 = vld [vmem:[%s1662_s6 + $0xe0] sm:$0xff]  ;;  %v1060_v40 = vld [vmem:[%s1662_s6 + $0xf8] sm:$0xff] }
  0x6d   : > { %1141 = vmatpush3.bf16.msra.mxu0 %v1286_v24  ;;  %v1059_v41 = vld [vmem:[%s1662_s6 + $0xf0] sm:$0xff]  ;;  %v1292_v12 = vld [vmem:[#allocation6 + $0x58] sm:$0xff]   ;;  %p1354_p8 = pneg %p1353_p6  ;;  %p1360_p0 = por %p1359_p11, %p1358_p12 }
  0x6e   : > { %384 = vrot.lane.b32.xlu1 %v1054_v15, %s1480_s22  ;;  %382 = vrot.lane.b32.xlu0 %v1053_v16, %s1480_s22  ;;  %v1291_v9 = vld [vmem:[#allocation6 + $0x50] sm:$0xff]  }
  0x6f   : > { %1142 = vmatprep.subr.bf16.mxu0 %v1288_v26  ;;  %1127 = vmatpush3.bf16.msra.mxu1 %v1287_v25  ;;  %p1361_p5 = pnand %p1360_p0, %p1354_p8 }
  0x70   : > { %1168 = vmatprep.subr.bf16.mxu1 %v1722_v35 }
  0x71   : > { %1143 = vmatpush3.bf16.msra.mxu0 %v1288_v26 }
  0x72   : > { %388 = vrot.lane.b32.xlu1 %v1056_v22, %s1480_s22  ;;  %386 = vrot.lane.b32.xlu0 %v1055_v23, %s1480_s22 }
  0x73   : > { %1152 = vmatprep.subr.bf16.mxu0 %v1722_v35 }
  0x76   : > { %292 = vrot.lane.b32.xlu1 %v1042_v29, %s1477_s24  ;;  %290 = vrot.lane.b32.xlu0 %v1041_v30, %s1477_s24 }
  0x7a   : > { %296 = vrot.lane.b32.xlu1 %v1044_v31, %s1477_s24  ;;  %294 = vrot.lane.b32.xlu0 %v1043_v32, %s1477_s24 }
  0x7e   : > { %342 = vrot.lane.b32.xlu1 %v1050_v33, %s1479_s20  ;;  %340 = vrot.lane.b32.xlu0 %v1049_v34, %s1479_s20 }
  0x82   : > { %346 = vrot.lane.b32.xlu1 %v1052_v36, %s1479_s20  ;;  %344 = vrot.lane.b32.xlu0 %v1051_v37, %s1479_s20 }
  0x86   : > { %392 = vrot.lane.b32.xlu1 %v1058_v38, %s1480_s22  ;;  %390 = vrot.lane.b32.xlu0 %v1057_v39, %s1480_s22 }
  0x8a   : > { %396 = vrot.lane.b32.xlu1 %v1060_v40, %s1480_s22  ;;  %394 = vrot.lane.b32.xlu0 %v1059_v41, %s1480_s22 }
  0xd0   : > { %v287_v42 = vpop.permute.xlu1 %286  ;;  %v283_v43 = vpop.permute.xlu0 %282 }
  0xd1   : > { %309 = vst.msk [vmem:[#allocation2 + $0x19] sm:$0xff] %vm306_vm2, %v287_v42  ;;  %307 = vst.msk [vmem:[#allocation2 + $0x1] sm:$0xff] %vm306_vm2, %v283_v43 }
  0xd4   : > { %v289_v44 = vpop.permute.xlu1 %288  ;;  %v285_v45 = vpop.permute.xlu0 %284 }
  0xd5   : > { %310 = vst.msk [vmem:[#allocation2 + $0x21] sm:$0xff] %vm306_vm2, %v289_v44  ;;  %308 = vst.msk [vmem:[#allocation2 + $0x9] sm:$0xff] %vm306_vm2, %v285_v45 }
  0xd8   : > { %v335_v46 = vpop.permute.xlu1 %334  ;;  %v333_v47 = vpop.permute.xlu0 %332 }
  0xd9   : > { %358 = vst.msk [vmem:[#allocation2 + $0x9] sm:$0xff] %vm356_vm3, %v335_v46  ;;  %357 = vst.msk [vmem:[#allocation2 + $0x1] sm:$0xff] %vm356_vm3, %v333_v47 }
  0xdc   : > { %v339_v48 = vpop.permute.xlu1 %338  ;;  %v337_v49 = vpop.permute.xlu0 %336 }
  0xdd   : > { %360 = vst.msk [vmem:[#allocation2 + $0x21] sm:$0xff] %vm356_vm3, %v339_v48  ;;  %359 = vst.msk [vmem:[#allocation2 + $0x19] sm:$0xff] %vm356_vm3, %v337_v49 }
  0xe0   : > { %v385_v50 = vpop.permute.xlu1 %384  ;;  %v383_v51 = vpop.permute.xlu0 %382 }
  0xe1   : > { %408 = vst.msk [vmem:[#allocation2 + $0x9] sm:$0xff] %vm406_vm4, %v385_v50  ;;  %407 = vst.msk [vmem:[#allocation2 + $0x1] sm:$0xff] %vm406_vm4, %v383_v51 }
  0xe4   : > { %v389_v52 = vpop.permute.xlu1 %388  ;;  %v387_v53 = vpop.permute.xlu0 %386 }
  0xe5   : > { %410 = vst.msk [vmem:[#allocation2 + $0x21] sm:$0xff] %vm406_vm4, %v389_v52  ;;  %409 = vst.msk [vmem:[#allocation2 + $0x19] sm:$0xff] %vm406_vm4, %v387_v53 }
  0xe8   : > { %v293_v54 = vpop.permute.xlu1 %292  ;;  %v291_v55 = vpop.permute.xlu0 %290  ;;  %v435_v56 = vld [vmem:[#allocation2 + $0x1] sm:$0xff]  ;;  %v436_v57 = vld [vmem:[#allocation2 + $0x9] sm:$0xff] }
  0xe9   : > { %v415_v58 = vld [vmem:[#allocation2] sm:$0xff]  ;;  %312 = vst.msk [vmem:[#allocation2 + $0x39] sm:$0xff] %vm306_vm2, %v293_v54  ;;  %311 = vst.msk [vmem:[#allocation2 + $0x31] sm:$0xff] %vm306_vm2, %v291_v55  ;;  %v443_v59 = vpack.c.bf16 %v436_v57, %v435_v56  ;;  %v416_v60 = vld [vmem:[#allocation2 + $0x8] sm:$0xff] }
  0xea   : > { %v423_v61 = vpack.c.bf16 %v416_v60, %v415_v58  ;;  %v659_v23 = vld [vmem:[#allocation2 + $0x2] sm:$0xff]  ;;  %v660_v24 = vld [vmem:[#allocation2 + $0xa] sm:$0xff] }
  0xeb   : > { %1128 = vmatprep.mubr.msk.bf16.mxu1 %vm480_vm5, %v443_v59  ;;  %v667_v34 = vpack.c.bf16 %v660_v24, %v659_v23 }
  0xec   : > { %1144 = vmatprep.mubr.msk.bf16.mxu0 %vm480_vm5, %v423_v61  ;;  %v297_v62 = vpop.permute.xlu1 %296  ;;  %v295_v63 = vpop.permute.xlu0 %294  ;;  %v437_v0 = vld [vmem:[#allocation2 + $0x19] sm:$0xff]  ;;  %v438_v1 = vld [vmem:[#allocation2 + $0x21] sm:$0xff] }
  0xed   : > { %v417_v2 = vld [vmem:[#allocation2 + $0x18] sm:$0xff]  ;;  %314 = vst.msk [vmem:[#allocation2 + $0x51] sm:$0xff] %vm306_vm2, %v297_v62  ;;  %313 = vst.msk [vmem:[#allocation2 + $0x49] sm:$0xff] %vm306_vm2, %v295_v63  ;;  %v444_v3 = vpack.c.bf16 %v438_v1, %v437_v0  ;;  %v418_v4 = vld [vmem:[#allocation2 + $0x20] sm:$0xff] }
  0xee   : > { %v424_v6 = vpack.c.bf16 %v418_v4, %v417_v2  ;;  %v661_v37 = vld [vmem:[#allocation2 + $0x1a] sm:$0xff]  ;;  %v662_v38 = vld [vmem:[#allocation2 + $0x22] sm:$0xff] }
  0xef   : > { %1129 = vmatmul.mubr.msk.bf16.vlgmr.msra.gmra.mrb[0].mxu1 %vm480_vm5, %v444_v3  ;;  %v668_v40 = vpack.c.bf16 %v662_v38, %v661_v37 }
  0xf0   : > { %1145 = vmatmul.mubr.msk.bf16.vlgmr.msra.gmra.mrb[0].mxu0 %vm480_vm5, %v424_v6  ;;  %v343_v7 = vpop.permute.xlu1 %342  ;;  %v341_v8 = vpop.permute.xlu0 %340  ;;  %1172 = vmatpush3.bf16.msra.mxu1 %v1722_v35 }
  0xf1   : > { %362 = vst.msk [vmem:[#allocation2 + $0x39] sm:$0xff] %vm356_vm3, %v343_v7  ;;  %361 = vst.msk [vmem:[#allocation2 + $0x31] sm:$0xff] %vm356_vm3, %v341_v8  ;;  %1153 = vmatpush3.bf16.msra.mxu0 %v1722_v35  ;;  %1169 = vmatprep.subr.bf16.mxu1 %v1290_v5 }
  0xf2   : > { %1154 = vmatprep.subr.bf16.mxu0 %v1290_v5 }
  0xf4   : > { %v347_v10 = vpop.permute.xlu1 %346  ;;  %v345_v11 = vpop.permute.xlu0 %344  ;;  %1173 = vmatpush3.bf16.msra.mxu1 %v1290_v5 }
  0xf5   : > { %364 = vst.msk [vmem:[#allocation2 + $0x51] sm:$0xff] %vm356_vm3, %v347_v10  ;;  %363 = vst.msk [vmem:[#allocation2 + $0x49] sm:$0xff] %vm356_vm3, %v345_v11  ;;  %1155 = vmatpush3.bf16.msra.mxu0 %v1290_v5  ;;  %1170 = vmatprep.subr.bf16.mxu1 %v1291_v9 }
  0xf6   : > { %1156 = vmatprep.subr.bf16.mxu0 %v1291_v9 }
  0xf8   : > { %v393_v13 = vpop.permute.xlu1 %392  ;;  %v391_v14 = vpop.permute.xlu0 %390  ;;  %1174 = vmatpush3.bf16.msra.mxu1 %v1291_v9 }
  0xf9   : > { %412 = vst.msk [vmem:[#allocation2 + $0x39] sm:$0xff] %vm406_vm4, %v393_v13  ;;  %411 = vst.msk [vmem:[#allocation2 + $0x31] sm:$0xff] %vm406_vm4, %v391_v14  ;;  %1157 = vmatpush3.bf16.msra.mxu0 %v1291_v9  ;;  %1171 = vmatprep.subr.bf16.mxu1 %v1292_v12 }
  0xfa   : > { %1158 = vmatprep.subr.bf16.mxu0 %v1292_v12 }
  0xfc   : > { %v397_v15 = vpop.permute.xlu1 %396  ;;  %v395_v16 = vpop.permute.xlu0 %394  ;;  %1175 = vmatpush3.bf16.msra.mxu1 %v1292_v12 }
  0xfd   : > { %414 = vst.msk [vmem:[#allocation2 + $0x51] sm:$0xff] %vm406_vm4, %v397_v15  ;;  %413 = vst.msk [vmem:[#allocation2 + $0x49] sm:$0xff] %vm406_vm4, %v395_v16  ;;  %1159 = vmatpush3.bf16.msra.mxu0 %v1292_v12 }
 0x100   : > { %v439_v17 = vld [vmem:[#allocation2 + $0x31] sm:$0xff]  ;;  %v440_v18 = vld [vmem:[#allocation2 + $0x39] sm:$0xff] }
 0x101   : > { %v419_v19 = vld [vmem:[#allocation2 + $0x30] sm:$0xff]  ;;  %v445_v20 = vpack.c.bf16 %v440_v18, %v439_v17  ;;  %v420_v21 = vld [vmem:[#allocation2 + $0x38] sm:$0xff] }
 0x102   : > { %v425_v22 = vpack.c.bf16 %v420_v21, %v419_v19  ;;  %v663_v25 = vld [vmem:[#allocation2 + $0x32] sm:$0xff]  ;;  %v664_v26 = vld [vmem:[#allocation2 + $0x3a] sm:$0xff] }
 0x103   : > { %1132 = vmatprep.mubr.msk.bf16.mxu1 %vm480_vm5, %v445_v20  ;;  %v669_v33 = vpack.c.bf16 %v664_v26, %v663_v25 }
 0x104   : > { %1148 = vmatprep.mubr.msk.bf16.mxu0 %vm480_vm5, %v425_v22  ;;  %v441_v27 = vld [vmem:[#allocation2 + $0x49] sm:$0xff]  ;;  %v442_v28 = vld [vmem:[#allocation2 + $0x51] sm:$0xff] }
 0x105   : > { %v421_v29 = vld [vmem:[#allocation2 + $0x48] sm:$0xff]  ;;  %v446_v30 = vpack.c.bf16 %v442_v28, %v441_v27  ;;  %v422_v31 = vld [vmem:[#allocation2 + $0x50] sm:$0xff] }
 0x106   : > { %v426_v32 = vpack.c.bf16 %v422_v31, %v421_v29  ;;  %v665_v35 = vld [vmem:[#allocation2 + $0x4a] sm:$0xff]  ;;  %v666_v36 = vld [vmem:[#allocation2 + $0x52] sm:$0xff] }
 0x107   : > { %1133 = vmatmul.mubr.msk.bf16.gmra.mrb[4].mxu1 %vm480_vm5, %v446_v30  ;;  %v670_v39 = vpack.c.bf16 %v666_v36, %v665_v35 }
 0x108   : > { %1149 = vmatmul.mubr.msk.bf16.gmra.mrb[4].mxu0 %vm480_vm5, %v426_v32  ;;  %1164 = vmatprep.mubr.msk.bf16.mxu1 %vm480_vm5, %v669_v33 }
 0x109   : > { %1160 = vmatprep.mubr.msk.bf16.mxu0 %vm480_vm5, %v667_v34 }
 0x10f   : > { %1165 = vmatmul.mubr.msk.bf16.vlgmr.msra.gmra.mrb[8].mxu1 %vm480_vm5, %v670_v39 }
 0x110   : > { %1161 = vmatmul.mubr.msk.bf16.vlgmr.msra.gmra.mrb[0].mxu0 %vm480_vm5, %v668_v40 }
 0x1c2   : > { %v1130_v41 = vpop.f32.mrb[0].mxu1 }
 0x1c3   : > { %v527_v42 = vpop.f32.mrb[1].mxu1 }
 0x1c4   : > { %v1131_v43 = vpop.f32.mrb[2].mxu1 }
 0x1c5   : > { %v530_v44 = vpop.f32.mrb[3].mxu1 }
 0x1da   : > { %v1134_v45 = vpop.f32.mrb[4].mxu1 }
 0x1db   : > { %v1150_v46 = vpop.f32.mrb[4].mxu0  ;;  %v543_v47 = vpop.f32.mrb[5].mxu1 }
 0x1dc   : > { %v653_v48 = vadd.f32 %v1150_v46, %v1134_v45  ;;  %v644_v49 = vpop.f32.mrb[5].mxu0  ;;  %v1135_v50 = vpop.f32.mrb[6].mxu1 }
 0x1dd   : > { %v645_v51 = vadd.f32 %v644_v49, %v543_v47  ;;  %v1151_v52 = vpop.f32.mrb[6].mxu0  ;;  %v546_v53 = vpop.f32.mrb[7].mxu1 }
 0x1de   : > { %v656_v54 = vadd.f32 %v1151_v52, %v1135_v50  ;;  %v647_v55 = vpop.f32.mrb[7].mxu0 }
 0x1df   : > { %v648_v56 = vadd.f32 %v647_v55, %v546_v53 }
 0x1e2   : > { %v1166_v57 = vpop.f32.mrb[8].mxu1 }
 0x1e3   : > { %v1162_v58 = vpop.f32.mrb[0].mxu0  ;;  %v1779_v59 = vadd.f32 %v1166_v57, %v653_v48  ;;  %v766_v60 = vpop.f32.mrb[9].mxu1 }
 0x1e4   : > { %v1176_v61 = vadd.f32 %v1162_v58, %v1130_v41  ;;  %v750_v62 = vpop.f32.mrb[1].mxu0  ;;  %v785_v63 = vadd.f32 %v766_v60, %v645_v51  ;;  %v1167_v0 = vpop.f32.mrb[10].mxu1 }
 0x1e5   : > { %795 = vst [vmem:[%s228_s10 + $0x30] sm:$0xff] %v1779_v59  ;;  %v1177_v1 = vadd.f32 %v750_v62, %v527_v42  ;;  %v1163_v2 = vpop.f32.mrb[2].mxu0  ;;  %v788_v3 = vadd.f32 %v1167_v0, %v656_v54  ;;  %v769_v4 = vpop.f32.mrb[11].mxu1 }
 0x1e6   : > { %791 = vst [vmem:[%s228_s10 + $0x10] sm:$0xff] %v1176_v61  ;;  %793 = vst [vmem:[%s228_s10 + $0x20] sm:$0xff] %v785_v63  ;;  %v1178_v5 = vadd.f32 %v1163_v2, %v1131_v43  ;;  %v753_v6 = vpop.f32.mrb[3].mxu0  ;;  %v786_v7 = vadd.f32 %v769_v4, %v648_v56 }
 0x1e7   : > { %789 = vst [vmem:[%s228_s10] sm:$0xff] %v1177_v1  ;;  %796 = vst [vmem:[%s228_s10 + $0x38] sm:$0xff] %v788_v3  ;;  %v1179_v8 = vadd.f32 %v753_v6, %v530_v44  ;;  %v810_v9 = vmul.f32 %v1177_v1, %v1177_v1 }
 0x1e8   : > { %792 = vst [vmem:[%s228_s10 + $0x18] sm:$0xff] %v1178_v5  ;;  %794 = vst [vmem:[%s228_s10 + $0x28] sm:$0xff] %v786_v7 }
 0x1e9   : > { %790 = vst [vmem:[%s228_s10 + $0x8] sm:$0xff] %v1179_v8  ;;  %v797_v10 = vadd.f32 %v1179_v8, %v1177_v1  ;;  %v811_v11 = vmul.f32 %v1179_v8, %v1179_v8 }
 0x1ea   : > { %1364 = shalt.err (!%p1361_p5)
}
 0x1eb   : > { %s1365_s6 = scalar_lea.hbm %s1788_s8, 1024  ;;  %s1369_s22 = scalar_lea.hbm %s1873_s2, 2048 }
 0x1ec   : > { %p1366_p9 = scmp.ne.s32.totalorder %s1788_s8, %s1365_s6  ;;  %p1370_p3 = scmp.lt.u32.totalorder %s1788_s8, %s1873_s2 }
 0x1ed   : > { %p1371_p7 = scmp.lt.u32.totalorder %s1369_s22, %s1365_s6  ;;  %p1373_p4 = scmp.lt.u32.totalorder %s1365_s6, %s1788_s8 }
 0x1ee   : > { %p1367_p1 = pnand %p1366_p9, %p1602_p10 }
 0x1ef   : > { %p1372_p13 = por %p1371_p7, %p1370_p3 }
 0x1f0   : > { %p1368_p2 = pneg %p1367_p1 }
 0x1f1   : > { %p1374_p6 = por %p1373_p4, %p1372_p13 }
 0x1f3   : > { %p1375_p8 = pnand %p1374_p6, %p1368_p2 }
 0x1f5   : > { %1378 = shalt.err (!%p1375_p8)
}
 0x1f6   : > { %s1482_s18 = smov 128   ;;  %s1483_s26 = smov 8   ;;  %v812_v12 = vmul.f32 %v1176_v61, %v1176_v61  ;;  %v798_v13 = vadd.f32 %v1176_v61, %v797_v10  ;;  %v818_v14 = vadd.f32 %v811_v11, %v810_v9  ;;  %v813_v15 = vmul.f32 %v1178_v5, %v1178_v5 }
 0x1f7   : > { %1198 = dma.vmem_to_hbm [thread:$0]  (%p1602_p10), %s1782_s11, 1024, %s1788_s8, %s855_s21, %s1482_s18, %s1482_s18, %s1483_s26   ;;  %v814_v18 = vmul.f32 %v785_v63, %v785_v63  ;;  %v815_v22 = vmul.f32 %v786_v7, %v786_v7  ;;  %v816_v24 = vmul.f32 %v1779_v59, %v1779_v59  ;;  %v817_v27 = vmul.f32 %v788_v3, %v788_v3 }
 0x1f8   : > { %v819_v16 = vadd.f32 %v818_v14, %v812_v12  ;;  %v799_v17 = vadd.f32 %v1178_v5, %v798_v13  ;;  %v1484_v36 = vmov 1966171168   ;;  %v837_v38 = vlaneseq  ;;  %s1036_s11 = sshll.u32 %s1658_s27, 1  ;;  %s1095_s7 = sshll.u32 %s1461_s15, 5 }
 0x1f9   : > { %v835_v37 = vunpack.c.l.s4 %v1484_v36  ;;  %s235_s8 = scalar_lea.vmem [#allocation9], %s1036_s11  ;;  %s1822_s29 = scalar_lea.hbm %s1874_s3, %s1095_s7 }
 0x1fa   : > { %v800_v19 = vadd.f32 %v799_v17, %v785_v63  ;;  %v820_v20 = vadd.f32 %v819_v16, %v813_v15  ;;  %v838_v44 = vshrl.u32 %v837_v38, 7  ;;  %s895_s21 = sshll.u32 %s235_s8, 4  ;;  %vm851_vm6 = vcmp.lt.s32.totalorder %v837_v38, 256  ;;  %s860_s4 = scalar_lea.sflag [#allocation10], %s1658_s27  ;;  %s1824_s21 = int_to_ptr.vmem [resolvable:$true] %s895_s21 }
 0x1fb   : > { %v836_v43 = vunpack.c.0.s8 %v835_v37  ;;  %s1379_s6 = scalar_lea.vmem %s1824_s21, 32  ;;  %s1485_s15 = smov [#allocation9]  }
 0x1fc   : > { %v801_v21 = vadd.f32 %v800_v19, %v786_v7  ;;  %v821_v23 = vadd.f32 %v820_v20, %v814_v18  ;;  %p1380_p12 = scmp.ne.s32.totalorder %s1824_s21, %s1379_s6  ;;  %s1383_s24 = sshll.u32 %s1485_s15, 4  ;;  %s1384_s24 = int_to_ptr.vmem [resolvable:$false] %s1383_s24 }
 0x1fd   : > { %v839_v48 = vsub.s32 %v836_v43, %v838_v44  ;;  %s1385_s20 = scalar_lea.vmem %s1384_s24, 64  ;;  %p1386_p5 = scmp.lt.s32.totalorder %s1824_s21, %s1384_s24 }
 0x1fe   : > { %v802_v25 = vadd.f32 %v801_v21, %v1779_v59  ;;  %v822_v26 = vadd.f32 %v821_v23, %v815_v22  ;;  %p1381_p11 = pnand %p1380_p12, %p1602_p10  ;;  %p1387_p9 = scmp.lt.s32.totalorder %s1385_s20, %s1379_s6 }
 0x200   : > { %v803_v28 = vadd.f32 %v802_v25, %v788_v3  ;;  %v823_v29 = vadd.f32 %v822_v26, %v816_v24  ;;  %p1382_p0 = pneg %p1381_p11  ;;  %p1388_p1 = por %p1387_p9, %p1386_p5 }
 0x202   : > { %v804_v30 = vrot.slane %v803_v28, 4  ;;  %v824_v31 = vadd.f32 %v823_v29, %v817_v27  ;;  %p1389_p2 = pnand %p1388_p1, %p1382_p0 }
 0x204   : > { %v805_v32 = vadd.f32 %v804_v30, %v803_v28  ;;  %v825_v33 = vrot.slane %v824_v31, 4 }
 0x206   : > { %v806_v34 = vrot.slane %v805_v32, 2  ;;  %v826_v35 = vadd.f32 %v825_v33, %v824_v31 }
 0x208   : > { %v807_v39 = vadd.f32 %v806_v34, %v805_v32  ;;  %v827_v40 = vrot.slane %v826_v35, 2 }
 0x20a   : > { %v808_v41 = vrot.slane %v807_v39, 1  ;;  %v828_v42 = vadd.f32 %v827_v40, %v826_v35 }
 0x20c   : > { %v829_v45 = vrot.slane %v828_v42, 1  ;;  %v809_v46 = vadd.f32 %v808_v41, %v807_v39 }
 0x20e   : > { %v830_v47 = vadd.f32 %v829_v45, %v828_v42 }
 0x210   : > { %v833_v49 = vcombine.low %v809_v46, %v830_v47 }
 0x212   : > { %v840_v50 = vrot.slane %v833_v49, %v839_v48 }
 0x214   : > { %v847_v51 = vrot.slane %v840_v50, %v839_v48 }
 0x216   : > { %853 = vst.msk [vmem:[%s235_s8] sm:$0x3] %vm851_vm6, %v847_v51 }
 0x217   : > { %1392 = shalt.err (!%p1389_p2)
}
 0x218   : > { %s1393_s27 = scalar_lea.hbm %s1822_s29, 32  ;;  %s1397_s10 = scalar_lea.hbm %s1874_s3, 64 }
 0x219   : > { %p1394_p3 = scmp.ne.s32.totalorder %s1822_s29, %s1393_s27  ;;  %p1398_p4 = scmp.lt.u32.totalorder %s1822_s29, %s1874_s3 }
 0x21a   : > { %p1399_p6 = scmp.lt.u32.totalorder %s1397_s10, %s1393_s27  ;;  %p1401_p12 = scmp.lt.u32.totalorder %s1393_s27, %s1822_s29 }
 0x21b   : > { %p1395_p7 = pnand %p1394_p3, %p1602_p10 }
 0x21c   : > { %p1400_p8 = por %p1399_p6, %p1398_p4 }
 0x21d   : > { %p1396_p13 = pneg %p1395_p7 }
 0x21e   : > { %p1402_p11 = por %p1401_p12, %p1400_p8 }
 0x220   : > { %p1403_p0 = pnand %p1402_p11, %p1396_p13 }
 0x222   : > { %1406 = shalt.err (!%p1403_p0)
}
 0x223   : > { %1199 = dma.vmem_to_hbm [thread:$0]  (%p1602_p10), %s1824_s21, 32, %s1822_s29, %s860_s4  }
 0x224 PF: > { %s907_s11 = sand.u32 1, %s1449_s12   ;;  %p1892_p5 = scmp.ne.s32.totalorder %s1882_s23, 0 }
 0x225   : > { %p1893_p9 = scmp.ge.s32.totalorder %s1469_s17, 2  ;;  %s908_s7 = scalar_lea.sflag [#allocation5], %s907_s11 }
 0x227   : > { %p1211_p1 = pnand %p1893_p9, %p1892_p5 }
 0x229   : > { %1440 = dma.done.wait (!%p1211_p1), %s908_s7, 1024  }
 0x22a   : > { %1442 = vsyncadd (!%p1211_p1), %s908_s7, 4294966272  ;;  %s917_s8 = scalar_lea.sflag [#allocation10], %s907_s11 }
 0x22b   : > { %1444 = dma.done.wait (!%p1211_p1), %s917_s8, 32  }
 0x22c   : > { %1446 = vsyncadd (!%p1211_p1), %s917_s8, 4294967264  ;;  %s24_s17 = sadd.s32 1, %s1469_s17   ;;  %s1894_s12 = smov %s1453_s13 }
 0x22d   : > { %p21_p2 = scmp.ge.s32.totalorder %s24_s17, 4   ;;  %s1895_s13 = smov %s1457_s14 }
 0x22e   : > { %s1896_s14 = smov %s1611_s5  ;;  %s1897_s15 = smov %s1465_s16 }
 0x22f   : > { %s1898_s16 = smov %s1900_s28  ;;  %23 = sbr.rel (!%p21_p2) target bundleno = 9 (0x9), region = 99 }
 0x236   :  { %922 = vsyncpa [#allocation4], 1 }
 0x237   :  { %924 = vsyncpa [#allocation4 + $0x1], 1 }
 0x238   :  { %925 = vsyncpa [#allocation7], 1 }
 0x239   :  { %926 = vsyncpa [#allocation5], 1 }
 0x23a   :  { %928 = vsyncpa [#allocation5 + $0x1], 1 }
 0x23b   :  { %929 = vsyncpa [#allocation10], 1 }
 0x23c   :  { %931 = vsyncpa [#allocation10 + $0x1], 1 }

</bundles_post_ra>
